<compile_context>
chip_gen: v5e
topology: v5e:2x2
jax: 0.10.0
libtpu: 0.0.40
codegen_flags: <defaults>
</compile_context>

<pallas_src>
import functools

import jax
import jax.numpy as jnp
import numpy as np
from jax.experimental import pallas as pl
from jax.experimental.pallas import tpu as pltpu

# Problem sizes (S=100 is pinned by nn.Linear(100, 100) / nn.Linear(200, 1)).
B, T, C, H, K, S = 2, 8, 4, 8, 3, 100
SP = 128                      # spatial lanes after zero-padding (one vreg lane tile)
WMAT_ROWS = 72                # 32 + 32 + 4 weight rows, padded to a sublane multiple
VECS_ROWS = 16

_ROLL_PLUS_ONE_MOVES_UP = None


def _roll_plus_one_moves_up():
    """True if pltpu.roll(x, 1, axis) moves data toward higher indices (np.roll).

    Resolved once with a tiny probe kernel so the conv-tap directions are robust to
    the rotation convention; runs eagerly (outside jit) and caches a Python bool.
    """
    global _ROLL_PLUS_ONE_MOVES_UP
    if _ROLL_PLUS_ONE_MOVES_UP is None:
        def probe(x_ref, o_ref):
            o_ref[...] = pltpu.roll(x_ref[...], 1, 1)

        x = jnp.broadcast_to(jax.lax.iota(jnp.float32, SP)[None, :], (8, SP))
        y = pl.pallas_call(probe, out_shape=jax.ShapeDtypeStruct((8, SP), jnp.float32))(x)
        _ROLL_PLUS_ONE_MOVES_UP = bool(np.asarray(y)[0, 1] == 0.0)
    return _ROLL_PLUS_ONE_MOVES_UP


# ---------------- kernel ----------------
def _attn_convlstm_kernel(x_ref, wmat_ref, vecs_ref, out_ref, gx_ref, *, roll_up):
    # Static roll amounts mapping v[s-1] -> s ("prev" tap) and v[s+1] -> s ("next" tap).
    def roll_prev(v):
        n = v.shape[1]
        return pltpu.roll(v, 1 if roll_up else n - 1, 1)

    def roll_next(v):
        n = v.shape[1]
        return pltpu.roll(v, n - 1 if roll_up else 1, 1)

    # ---- loop-invariant parameter loads (one slab slice each) ----
    wx = wmat_ref[0:4 * H, 0:K * C + 1]          # (4H, 3C+1) encoder input taps + bias col
    wh = wmat_ref[4 * H:8 * H, 0:K * H]          # (4H, 3H)   encoder recurrent taps
    wd = wmat_ref[8 * H:8 * H + 4, 0:K * H + K]  # (4, 3H+3)  decoder taps (h chans folded)
    dec_add_t0 = vecs_ref[0:4, :]                # (4, SP)  bdec + conv of [0; 1] initial h_d
    dec_add = vecs_ref[4:8, :]                   # (4, SP)  bdec broadcast
    wfc_sum = vecs_ref[8:9, :]                   # (1, SP)  FC weights, both channels summed
    bfc = vecs_ref[9:10, 0:1]                    # (1, 1)

    valid_h = jax.lax.broadcasted_iota(jnp.int32, (H, SP), 1) < S   # hoisted pad-lane masks
    valid_1 = jax.lax.broadcasted_iota(jnp.int32, (1, SP), 1) < S
    lane_t = jax.lax.broadcasted_iota(jnp.int32, (1, T), 1)

    # ---- hoisted: input-dependent encoder gate half (+ bias) for all T at once ----
    # One (4H, 3C+1) @ (3C+1, T*SP) matmul, parked in VMEM scratch.  Each step's pad
    # lanes are zero, so the +/-1 taps across step seams automatically read zeros.
    x_all = x_ref[0]                                             # (C, T*SP)
    zc = jnp.zeros((C, 1), jnp.float32)
    x_prev = jnp.concatenate([zc, x_all[:, :-1]], axis=1)        # value at s-1 (off-chain)
    x_next = jnp.concatenate([x_all[:, 1:], zc], axis=1)         # value at s+1
    ones_row = jnp.ones((1, T * SP), jnp.float32)                # drives the bias column
    x_stack = jnp.concatenate([x_prev, x_all, x_next, ones_row], axis=0)   # (3C+1, T*SP)
    gx_ref[...] = jnp.dot(wx, x_stack, preferred_element_type=jnp.float32)

    # ---- recurrent state, carried in vregs across the statically unrolled time loop ----
    h_e = jnp.zeros((H, SP), jnp.float32)
    c_e = jnp.zeros((H, SP), jnp.float32)
    c_d = jnp.zeros((1, SP), jnp.float32)        # decoder cell state (channel 0)
    h_d = jnp.zeros((1, SP), jnp.float32)        # decoder hidden (folded h input; 0 at t=0)
    logits = jnp.zeros((1, T), jnp.float32)

    for t in range(T):                           # static unroll, T == 8
        # -- encoder ConvLSTM cell: recurrent half only (input half precomputed above) --
        h_stack = jnp.concatenate([roll_prev(h_e), h_e, roll_next(h_e)], axis=0)  # (3H, SP)
        gates_e = gx_ref[:, t * SP:(t + 1) * SP] + jnp.dot(
            wh, h_stack, preferred_element_type=jnp.float32)                      # (4H, SP)
        sig_e = jax.nn.sigmoid(gates_e[0:3 * H])         # fused i|f|o sigmoid (one EUP stream)
        g_e = jnp.tanh(gates_e[3 * H:4 * H])
        c_e = sig_e[H:2 * H] * c_e + sig_e[0:H] * g_e
        h_e = sig_e[2 * H:3 * H] * jnp.tanh(c_e)
        c_e = jnp.where(valid_h, c_e, 0.0)               # keep pad lanes zero: they feed the
        h_e = jnp.where(valid_h, h_e, 0.0)               # rolled conv taps of the next ops

        # -- decoder ConvLSTM cell (hidden_dim=1), input = encoder cell state.  Softmax
        #    over the size-1 attention axis is exactly 1.0, so both decoder-h channels
        #    equal h_d and their weights are folded into wd's last K columns. --
        dec_stack = jnp.concatenate(
            [roll_prev(c_e), c_e, roll_next(c_e),
             roll_prev(h_d), h_d, roll_next(h_d)], axis=0)                        # (3H+3, SP)
        gates_d = jnp.dot(wd, dec_stack, preferred_element_type=jnp.float32)
        gates_d = gates_d + (dec_add_t0 if t == 0 else dec_add)  # t=0 carries [0;1] init term
        sig_d = jax.nn.sigmoid(gates_d[0:3])
        g_d = jnp.tanh(gates_d[3:4])
        c_d = sig_d[1:2] * c_d + sig_d[0:1] * g_d
        h_d = jnp.where(valid_1, sig_d[2:3] * jnp.tanh(c_d), 0.0)

        # -- FC head: both layer-output channels equal h_d -> single (1, S) dot --
        s_t = jnp.sum(h_d * wfc_sum, axis=1, keepdims=True)      # (1, 1)
        logits = jnp.where(lane_t == t, s_t, logits)             # place scalar at lane t

    # One lane-dense writeback per batch.
    out_ref[...] = jax.nn.sigmoid(logits + bfc).reshape(1, 1, T)


# ---------------- wrapper ----------------
def attention_convlstm_forward(x, packed_params):
    wmat, vecs = packed_params
    xp = jnp.pad(x, ((0, 0), (0, 0), (0, 0), (0, SP - S)))            # zero-pad lanes
    x_lanes = jnp.transpose(xp, (0, 2, 1, 3)).reshape(B, C, T * SP)   # time-major lanes
    kernel = functools.partial(_attn_convlstm_kernel,
                               roll_up=_roll_plus_one_moves_up())
    out = pl.pallas_call(
        kernel,
        out_shape=jax.ShapeDtypeStruct((B, 1, T), jnp.float32),
        grid_spec=pltpu.PrefetchScalarGridSpec(
            num_scalar_prefetch=0,
            grid=(B,),
            in_specs=[
                pl.BlockSpec((1, C, T * SP), lambda b: (b, 0, 0)),
                pl.BlockSpec((WMAT_ROWS, SP), lambda b: (0, 0)),
                pl.BlockSpec((VECS_ROWS, SP), lambda b: (0, 0)),
            ],
            out_specs=pl.BlockSpec((1, 1, T), lambda b: (b, 0, 0)),
            scratch_shapes=[pltpu.VMEM((4 * H, T * SP), jnp.float32)],
        ),
        compiler_params=pltpu.CompilerParams(
            dimension_semantics=("parallel",)),
    )(x_lanes, wmat, vecs)
    return jnp.transpose(out, (0, 2, 1))   # (B, T, 1)


def pack_params(raw):
    """Pack the PyTorch-layout parameters into two lane-aligned slabs.

    W_att / b_att only feed a softmax over a size-1 channel axis (identically 1.0),
    so they cancel exactly and are not needed by the kernel.
    """
    W_enc, b_enc, W_dec, b_dec, W_att, b_att, W_fc, b_fc = raw

    def pad_lanes(m):
        return jnp.pad(m, ((0, 0), (0, SP - m.shape[1])))

    # Encoder: split input / recurrent taps; bias folded in as an extra "ones" column.
    wx = jnp.concatenate([W_enc[:, :C, k] for k in range(K)] + [b_enc[:, None]], axis=1)
    wh = jnp.concatenate([W_enc[:, C:, k] for k in range(K)], axis=1)
    # Decoder: first H channels take the encoder cell state; the two (identical, att==1)
    # hidden channels are folded into one summed weight column per tap.
    wd_c = jnp.concatenate([W_dec[:, :H, k] for k in range(K)], axis=1)
    wd_h = W_dec[:, H, :] + W_dec[:, H + 1, :]
    wd = jnp.concatenate([wd_c, wd_h], axis=1)

    wmat = jnp.concatenate(
        [pad_lanes(wx), pad_lanes(wh), pad_lanes(wd),
         jnp.zeros((WMAT_ROWS - (8 * H + 4), SP), jnp.float32)], axis=0)

    # t=0 additive constant: the initial decoder hidden state is [zeros; ones]; the
    # "ones" channel contributes a fixed conv response of the second h-channel weights.
    w_ones = W_dec[:, H + 1, :]                                        # (4, K)
    ones_row = jnp.ones((1, S), jnp.float32)
    ones_prev = jnp.concatenate([jnp.zeros((1, 1)), ones_row[:, :-1]], axis=1)
    ones_next = jnp.concatenate([ones_row[:, 1:], jnp.zeros((1, 1))], axis=1)
    conv_ones = (w_ones[:, 0:1] * ones_prev + w_ones[:, 1:2] * ones_row
                 + w_ones[:, 2:3] * ones_next)                         # (4, S)
    dec_bias = jnp.broadcast_to(b_dec[:, None], (4, S))
    wfc_sum = W_fc[:, :S] + W_fc[:, S:]                                # (1, S)

    vecs = jnp.zeros((VECS_ROWS, SP), jnp.float32)
    vecs = vecs.at[0:4, :S].set(conv_ones + dec_bias)
    vecs = vecs.at[4:8, :S].set(dec_bias)
    vecs = vecs.at[8, :S].set(wfc_sum[0])
    vecs = vecs.at[9, 0].set(b_fc[0])
    return (wmat, vecs)


# ---------------- pure-JAX reference (full semantics, incl. attention) ----------------
def reference_forward(x, raw):
    W_enc, b_enc, W_dec, b_dec, W_att, b_att, W_fc, b_fc = raw

    def conv1d(x_bcs, w, b):  # cross-correlation, pad=1, K=3
        xp = jnp.pad(x_bcs, ((0, 0), (0, 0), (1, 1)))
        out = b[None, :, None]
        for k in range(K):
            out = out + jnp.einsum('oc,bcs->bos', w[:, :, k], xp[:, :, k:k + S])
        return out

    h_e = jnp.zeros((B, H, S), jnp.float32)
    c_e = jnp.zeros((B, H, S), jnp.float32)
    h_d = jnp.concatenate([jnp.zeros((B, 1, S)), jnp.ones((B, 1, S))], axis=1)
    c_d = h_d
    outs = []
    for t in range(T):
        comb = jnp.concatenate([x[:, t], h_e], axis=1)
        g = conv1d(comb, W_enc, b_enc)
        i = jax.nn.sigmoid(g[:, :H]); f = jax.nn.sigmoid(g[:, H:2 * H])
        o = jax.nn.sigmoid(g[:, 2 * H:3 * H]); gg = jnp.tanh(g[:, 3 * H:])
        c_e = f * c_e + i * gg
        h_e = o * jnp.tanh(c_e)

        comb_d = jnp.concatenate([c_e, h_d], axis=1)
        gd = conv1d(comb_d, W_dec, b_dec)
        i_d = jax.nn.sigmoid(gd[:, 0:1]); f_d = jax.nn.sigmoid(gd[:, 1:2])
        o_d = jax.nn.sigmoid(gd[:, 2:3]); g_d = jnp.tanh(gd[:, 3:4])
        c_dn = f_d * c_d[:, 0:1] + i_d * g_d
        h_dn = o_d * jnp.tanh(c_dn)

        att = jax.nn.softmax(jnp.tanh(c_dn @ W_att.T + b_att), axis=1)
        c_d = jnp.concatenate([c_dn, att * c_dn], axis=1)
        h_d = jnp.concatenate([h_dn, att * h_dn], axis=1)
        outs.append(h_d)
    lay = jnp.stack(outs, axis=1)                     # (B, T, 2, S)
    flat = lay.reshape(B, T, 2 * S)
    return jax.nn.sigmoid(flat @ W_fc.T + b_fc)       # (B, T, 1)


if __name__ == "__main__":
    key = jax.random.PRNGKey(0)
    keys = jax.random.split(key, 9)
    scale = 0.2
    raw_params = (
        jax.random.normal(keys[0], (4 * H, C + H, K), jnp.float32) * scale,  # encoder conv W
        jax.random.normal(keys[1], (4 * H,), jnp.float32) * scale,           # encoder conv b
        jax.random.normal(keys[2], (4, H + 2, K), jnp.float32) * scale,      # decoder conv W
        jax.random.normal(keys[3], (4,), jnp.float32) * scale,               # decoder conv b
        jax.random.normal(keys[4], (S, S), jnp.float32) * scale,             # attention_dec W
        jax.random.normal(keys[5], (S,), jnp.float32) * scale,               # attention_dec b
        jax.random.normal(keys[6], (1, 2 * S), jnp.float32) * scale,         # FC W
        jax.random.normal(keys[7], (1,), jnp.float32) * scale,               # FC b
    )
    x = jax.random.normal(keys[8], (B, T, C, S), jnp.float32)

    packed = pack_params(raw_params)
    out = attention_convlstm_forward(x, packed)
    out = jax.block_until_ready(out)

    ref = jax.block_until_ready(reference_forward(x, raw_params))
    np.testing.assert_allclose(np.asarray(out), np.asarray(ref), rtol=1e-4, atol=1e-4)
    print("KERNEL_OK")
</pallas_src>

<mosaic_0001>
module attributes {stable_mosaic.version = 11 : i64} {
  func.func @probe(%arg0: memref<8x128xf32, #tpu.memory_space<vmem>>, %arg1: memref<8x128xf32, #tpu.memory_space<vmem>>) attributes {dimension_semantics = [], scalar_prefetch = 0 : i64, scratch_operands = 0 : i64, tpu.core_type = #tpu.core_type<tc>} {
    %c0 = arith.constant 0 : index
    %c0_0 = arith.constant 0 : index
    %0 = vector.load %arg0[%c0, %c0_0] : memref<8x128xf32, #tpu.memory_space<vmem>>, vector<8x128xf32>
    %c1_i32 = arith.constant 1 : i32
    %1 = tpu.dynamic_rotate %0 by %c1_i32 dim 1 : vector<8x128xf32>, i32 -> vector<8x128xf32>
    %c0_1 = arith.constant 0 : index
    %c0_2 = arith.constant 0 : index
    %2 = vector.load %arg1[%c0_1, %c0_2] : memref<8x128xf32, #tpu.memory_space<vmem>>, vector<8x128xf32>
    tpu.vector_store %arg1[%c0_1, %c0_2], %1 {strides = array<i32>} : memref<8x128xf32, #tpu.memory_space<vmem>>, vector<8x128xf32>,
    return
  }
}

</mosaic_0001>

<bundles_post_ra>
// kernel: tpu_custom_call.1
= control target key start
LH: loop header
LB: loop body
LE: loop exit
PB: predicated region body
PF: predicated region fallthrough
CT: control target
= control target key end

     0   :  { %6 = vsyncpa [#allocation3], 0  ;;  %s118_s0 = inlined_call_operand.hbm [shape: f32[8,128], index: 0, kind: input, shape index: {}]   ;;  %s119_s1 = inlined_call_operand.hbm [shape: f32[8,128], index: 1, kind: output, shape index: {}]  }
   0x1   :  { %7 = vsyncpa [#allocation4], 0  ;;  %s13_s8 = sshll.u32 %s118_s0, 4  ;;  %s99_s9 = smov [#allocation2]   ;;  %s14_s8 = int_to_ptr.hbm [resolvable:$true] %s13_s8 }
   0x2   :  { %s15_s10 = sshll.u32 %s99_s9, 4  ;;  %s16_s10 = int_to_ptr.vmem [resolvable:$true] %s15_s10 }
   0x3   :  { %18 = dma.hbm_to_vmem [thread:$0]  %s14_s8, 128, %s16_s10, [#allocation3]  }
   0x4   :  { %95 = dma.done.wait [#allocation3], 128  }
   0x5   :  { %96 = vsyncadd [#allocation3], 4294967168  ;;  %v23_v0 = vld [vmem:[#allocation2] sm:$0xff]  ;;  %s100_s11 = smov 1   ;;  %s101_s12 = smov [#allocation5]  }
   0x6   :  { %24 = vrot.lane.b32.xlu0 %v23_v0, %s100_s11  ;;  %s32_s13 = sshll.u32 %s101_s12, 4  ;;  %s34_s16 = sshll.u32 %s119_s1, 4  ;;  %s33_s13 = int_to_ptr.vmem [resolvable:$true] %s32_s13  ;;  %s35_s16 = int_to_ptr.hbm [resolvable:$true] %s34_s16 }
  0x78   :  { %v25_v1 = vpop.permute.xlu0 %24 }
  0x79   :  { %26 = vst [vmem:[#allocation5] sm:$0xff] %v25_v1 }
  0x7a   :  { %37 = dma.vmem_to_hbm [thread:$0]  %s33_s13, 128, %s35_s16, [#allocation4]  }
  0x7b   :  { %97 = dma.done.wait [#allocation4], 128  }
  0x7c   :  { %98 = vsyncadd [#allocation4], 4294967168 }
  0x7d   :  { %42 = vsyncpa [#allocation3], 1 }
  0x7e   :  { %43 = vsyncpa [#allocation4], 1 }

</bundles_post_ra>
